<compile_context>
chip_gen: v5e
topology: v5e:2x2
jax: 0.10.0
libtpu: 0.0.40
codegen_flags: <defaults>
</compile_context>

<pallas_src>
import jax
import jax.numpy as jnp
from jax.experimental import pallas as pl
from jax.experimental.pallas import tpu as pltpu


def _round_up(n: int, m: int) -> int:
    return ((n + m - 1) // m) * m


def categorical_policy_kernel(x_ref, a_ref, g_ref,
                              w1_ref, b1_ref, w23_ref, b23_ref,
                              out_ref):
    x = x_ref[...].astype(jnp.float32)                                    # (TB, odim)

    # Layer 1: Linear + ReLU.
    h1 = jnp.dot(x, w1_ref[...], preferred_element_type=jnp.float32) + b1_ref[...]
    h1 = jnp.maximum(h1, 0.0)

    # Fused (Linear2 o logits head): the reference MLP applies no activation
    # after the second hidden Linear, so W23 = W2@W3, b23 = b2@W3 + b3 is exact.
    logits = (jnp.dot(h1, w23_ref[...], preferred_element_type=jnp.float32)
              + b23_ref[...])                                             # (TB, A)

    # Numerically stable log-softmax (== log of Categorical(probs=softmax)).
    m = jnp.max(logits, axis=-1, keepdims=True)
    z = logits - m
    lse = jnp.log(jnp.sum(jnp.exp(z), axis=-1, keepdims=True))
    logsm = z - lse                                                       # (TB, A)

    # Categorical sampling via the Gumbel-max trick (noise precomputed outside).
    score = logits + g_ref[...]
    adim = score.shape[-1]
    col = jax.lax.broadcasted_iota(jnp.int32, score.shape, 1)
    smax = jnp.max(score, axis=-1, keepdims=True)
    pi = jnp.min(jnp.where(score == smax, col, adim),
                 axis=-1, keepdims=True)                                  # (TB, 1) i32

    # log-prob "gather" via one-hot masks.
    pi_oh = (col == pi)
    a_oh = (col == a_ref[...])
    logp_pi = jnp.sum(jnp.where(pi_oh, logsm, 0.0), axis=-1, keepdims=True)
    logp = jnp.sum(jnp.where(a_oh, logsm, 0.0), axis=-1, keepdims=True)

    # Pack [logp_pi, logp, pi] into one (TB, 3) slab (single output writeback).
    ocol = jax.lax.broadcasted_iota(jnp.int32, out_ref.shape, 1)
    out_ref[...] = jnp.where(ocol == 0, logp_pi,
                             jnp.where(ocol == 1, logp, pi.astype(jnp.float32)))


def categorical_policy_forward(params, x, a, key, *, block_b=256):
    """Pallas CategoricalPolicy.forward -> (pi, logp_pi, logp, pi)."""
    w1, b1, w2, b2, w3, b3 = params
    B, odim = x.shape
    hdim = w1.shape[1]
    adim = w3.shape[1]

    # Offline fusion of the activation-free tail (exact for the reference MLP).
    hp = jax.lax.Precision.HIGHEST
    w23 = jnp.dot(w2, w3, precision=hp)                  # (hdim, adim)
    b23 = jnp.dot(b2, w3, precision=hp) + b3             # (1, adim)

    # Batch tiling: largest tile <= block_b, multiple of 8 sublanes.
    tb = min(int(block_b), _round_up(B, 8))
    b_pad = _round_up(B, tb)
    pad = b_pad - B

    x_p = jnp.pad(x.astype(jnp.float32), ((0, pad), (0, 0)))
    a_p = jnp.pad(jnp.clip(a.astype(jnp.int32), 0, adim - 1),
                  ((0, pad),)).reshape(b_pad, 1)
    gumbel = jax.random.gumbel(key, (b_pad, adim), jnp.float32)

    grid = (b_pad // tb,)
    flops = 2 * b_pad * (odim * hdim + hdim * adim)
    bytes_accessed = 4 * (b_pad * (odim + adim + 1 + 3)
                          + odim * hdim + hdim + hdim * adim + adim)

    out = pl.pallas_call(
        categorical_policy_kernel,
        out_shape=jax.ShapeDtypeStruct((b_pad, 3), jnp.float32),
        grid_spec=pltpu.PrefetchScalarGridSpec(
            num_scalar_prefetch=0,
            grid=grid,
            in_specs=[
                pl.BlockSpec((tb, odim), lambda i: (i, 0)),     # x tile (pipelined)
                pl.BlockSpec((tb, 1), lambda i: (i, 0)),        # actions tile
                pl.BlockSpec((tb, adim), lambda i: (i, 0)),     # gumbel noise tile
                pl.BlockSpec((odim, hdim), lambda i: (0, 0)),   # W1 (resident)
                pl.BlockSpec((1, hdim), lambda i: (0, 0)),      # b1 (resident)
                pl.BlockSpec((hdim, adim), lambda i: (0, 0)),   # W2@W3 (resident)
                pl.BlockSpec((1, adim), lambda i: (0, 0)),      # b2@W3 + b3 (resident)
            ],
            out_specs=pl.BlockSpec((tb, 3), lambda i: (i, 0)),
        ),
        compiler_params=pltpu.CompilerParams(
            dimension_semantics=("parallel",)),
        cost_estimate=pl.CostEstimate(
            flops=flops,
            transcendentals=2 * b_pad * adim,
            bytes_accessed=bytes_accessed),
    )(x_p, a_p, gumbel, w1, b1, w23, b23)

    logp_pi = out[:B, 0]
    logp = out[:B, 1]
    pi = out[:B, 2].astype(jnp.int32)
    return pi, logp_pi, logp, pi


def init_params(key, odim, adim, hdims=(64, 64)):
    """Deterministic synthetic parameters (stored as (in, out) matrices)."""
    k1, k2, k3 = jax.random.split(key, 3)
    scale = 0.1
    w1 = scale * jax.random.normal(k1, (odim, hdims[0]), jnp.float32)
    b1 = jnp.zeros((1, hdims[0]), jnp.float32)
    w2 = scale * jax.random.normal(k2, (hdims[0], hdims[1]), jnp.float32)
    b2 = jnp.zeros((1, hdims[1]), jnp.float32)
    w3 = scale * jax.random.normal(k3, (hdims[1], adim), jnp.float32)
    b3 = jnp.zeros((1, adim), jnp.float32)
    return (w1, b1, w2, b2, w3, b3)


if __name__ == "__main__":
    B, odim, adim = 8, 24, 8
    key = jax.random.PRNGKey(0)
    kp, kx, ka, ks = jax.random.split(key, 4)

    params = init_params(kp, odim, adim, hdims=(64, 64))
    x = jax.random.normal(kx, (B, odim), jnp.float32)
    a = jax.random.randint(ka, (B,), 0, adim, jnp.int32)

    pi, logp_pi, logp, pi2 = categorical_policy_forward(params, x, a, ks)
    jax.block_until_ready((pi, logp_pi, logp, pi2))

    # Pure-JAX reference of the forward math (same weights, unfused).
    w1, b1, w2, b2, w3, b3 = params
    hp = jax.lax.Precision.HIGHEST
    h1 = jnp.maximum(jnp.dot(x, w1, precision=hp) + b1, 0.0)
    h2 = jnp.dot(h1, w2, precision=hp) + b2
    logits = jnp.dot(h2, w3, precision=hp) + b3
    logsm = jax.nn.log_softmax(logits, axis=-1)
    rows = jnp.arange(B)

    assert bool(jnp.all((pi >= 0) & (pi < adim)))
    assert bool(jnp.all(logp_pi <= 0.0)) and bool(jnp.all(logp <= 0.0))
    assert bool(jnp.allclose(logp, logsm[rows, a], atol=1e-3, rtol=1e-3))
    assert bool(jnp.allclose(logp_pi, logsm[rows, pi], atol=1e-3, rtol=1e-3))
    print("KERNEL_OK")
</pallas_src>

<mosaic_0001>
module attributes {stable_mosaic.version = 11 : i64} {
  func.func @categorical_policy_kernel(%arg0: i32, %arg1: memref<8x24xf32, #tpu.memory_space<vmem>>, %arg2: memref<8x1xi32, #tpu.memory_space<vmem>>, %arg3: memref<8x8xf32, #tpu.memory_space<vmem>>, %arg4: memref<24x64xf32, #tpu.memory_space<vmem>>, %arg5: memref<1x64xf32, #tpu.memory_space<vmem>>, %arg6: memref<64x8xf32, #tpu.memory_space<vmem>>, %arg7: memref<1x8xf32, #tpu.memory_space<vmem>>, %arg8: memref<8x3xf32, #tpu.memory_space<vmem>>) attributes {dimension_semantics = [#tpu.dimension_semantics<parallel>], iteration_bounds = array<i64: 1>, scalar_prefetch = 0 : i64, scratch_operands = 0 : i64, tpu.core_type = #tpu.core_type<tc>, window_params = [{transform_indices = @transform_0, window_bounds = array<i64: 8, 24>}, {transform_indices = @transform_1, window_bounds = array<i64: 8, 1>}, {transform_indices = @transform_2, window_bounds = array<i64: 8, 8>}, {pipeline_mode = #tpu.pipeline_mode<synchronous>, transform_indices = @transform_3, window_bounds = array<i64: 24, 64>}, {pipeline_mode = #tpu.pipeline_mode<synchronous>, transform_indices = @transform_4, window_bounds = array<i64: 1, 64>}, {pipeline_mode = #tpu.pipeline_mode<synchronous>, transform_indices = @transform_5, window_bounds = array<i64: 64, 8>}, {pipeline_mode = #tpu.pipeline_mode<synchronous>, transform_indices = @transform_6, window_bounds = array<i64: 1, 8>}, {transform_indices = @transform_7, window_bounds = array<i64: 8, 3>}]} {
    %c0 = arith.constant 0 : index
    %c0_0 = arith.constant 0 : index
    %0 = vector.load %arg1[%c0, %c0_0] : memref<8x24xf32, #tpu.memory_space<vmem>>, vector<8x24xf32>
    %c0_1 = arith.constant 0 : index
    %c0_2 = arith.constant 0 : index
    %1 = vector.load %arg4[%c0_1, %c0_2] : memref<24x64xf32, #tpu.memory_space<vmem>>, vector<24x64xf32>
    %cst = arith.constant dense<0.000000e+00> : vector<8x64xf32>
    %2 = tpu.matmul %0, %1, %cst {dimension_numbers = #tpu.dot_dimension_numbers<[1], [0], [0], [1], [0, 0, 1, 1], [], []>} : vector<8x24xf32>, vector<24x64xf32>, vector<8x64xf32> -> vector<8x64xf32>
    %c0_3 = arith.constant 0 : index
    %c0_4 = arith.constant 0 : index
    %3 = vector.load %arg5[%c0_3, %c0_4] : memref<1x64xf32, #tpu.memory_space<vmem>>, vector<1x64xf32>
    %4 = vector.broadcast %3 : vector<1x64xf32> to vector<8x64xf32>
    %5 = arith.addf %2, %4 : vector<8x64xf32>
    %cst_5 = arith.constant 0.000000e+00 : f32
    %6 = vector.broadcast %cst_5 : f32 to vector<8x64xf32>
    %7 = arith.maximumf %5, %6 : vector<8x64xf32>
    %c0_6 = arith.constant 0 : index
    %c0_7 = arith.constant 0 : index
    %8 = vector.load %arg6[%c0_6, %c0_7] : memref<64x8xf32, #tpu.memory_space<vmem>>, vector<64x8xf32>
    %cst_8 = arith.constant dense<0.000000e+00> : vector<8x8xf32>
    %9 = tpu.matmul %7, %8, %cst_8 {dimension_numbers = #tpu.dot_dimension_numbers<[1], [0], [0], [1], [0, 0, 1, 1], [], []>} : vector<8x64xf32>, vector<64x8xf32>, vector<8x8xf32> -> vector<8x8xf32>
    %c0_9 = arith.constant 0 : index
    %c0_10 = arith.constant 0 : index
    %10 = vector.load %arg7[%c0_9, %c0_10] : memref<1x8xf32, #tpu.memory_space<vmem>>, vector<1x8xf32>
    %11 = vector.broadcast %10 : vector<1x8xf32> to vector<8x8xf32>
    %12 = arith.addf %9, %11 : vector<8x8xf32>
    %cst_11 = arith.constant dense<0xFF800000> : vector<8xf32>
    %13 = vector.multi_reduction <maximumf>, %12, %cst_11 [1] : vector<8x8xf32> to vector<8xf32>
    %14 = vector.shape_cast %13 : vector<8xf32> to vector<8x1xf32>
    %15 = vector.broadcast %14 : vector<8x1xf32> to vector<8x8xf32>
    %16 = arith.subf %12, %15 : vector<8x8xf32>
    %17 = math.exp %16 : vector<8x8xf32>
    %cst_12 = arith.constant dense<0.000000e+00> : vector<8xf32>
    %18 = vector.multi_reduction <add>, %17, %cst_12 [1] : vector<8x8xf32> to vector<8xf32>
    %19 = vector.shape_cast %18 : vector<8xf32> to vector<8x1xf32>
    %20 = math.log %19 : vector<8x1xf32>
    %21 = vector.broadcast %20 : vector<8x1xf32> to vector<8x8xf32>
    %22 = arith.subf %16, %21 : vector<8x8xf32>
    %c0_13 = arith.constant 0 : index
    %c0_14 = arith.constant 0 : index
    %23 = vector.load %arg3[%c0_13, %c0_14] : memref<8x8xf32, #tpu.memory_space<vmem>>, vector<8x8xf32>
    %24 = arith.addf %12, %23 : vector<8x8xf32>
    %25 = tpu.iota {dimensions = array<i32: 1>} : vector<8x8xi32>
    %cst_15 = arith.constant dense<0xFF800000> : vector<8xf32>
    %26 = vector.multi_reduction <maximumf>, %24, %cst_15 [1] : vector<8x8xf32> to vector<8xf32>
    %27 = vector.shape_cast %26 : vector<8xf32> to vector<8x1xf32>
    %28 = vector.broadcast %27 : vector<8x1xf32> to vector<8x8xf32>
    %29 = arith.cmpf oeq, %24, %28 : vector<8x8xf32>
    %c8_i32 = arith.constant 8 : i32
    %30 = vector.broadcast %c8_i32 : i32 to vector<8x8xi32>
    %31 = arith.select %29, %25, %30 : vector<8x8xi1>, vector<8x8xi32>
    %cst_16 = arith.constant dense<2147483647> : vector<8xi32>
    %32 = vector.multi_reduction <minsi>, %31, %cst_16 [1] : vector<8x8xi32> to vector<8xi32>
    %33 = vector.shape_cast %32 : vector<8xi32> to vector<8x1xi32>
    %34 = vector.broadcast %33 : vector<8x1xi32> to vector<8x8xi32>
    %35 = arith.cmpi eq, %25, %34 : vector<8x8xi32>
    %c0_17 = arith.constant 0 : index
    %c0_18 = arith.constant 0 : index
    %36 = vector.load %arg2[%c0_17, %c0_18] : memref<8x1xi32, #tpu.memory_space<vmem>>, vector<8x1xi32>
    %37 = vector.broadcast %36 : vector<8x1xi32> to vector<8x8xi32>
    %38 = arith.cmpi eq, %25, %37 : vector<8x8xi32>
    %cst_19 = arith.constant 0.000000e+00 : f32
    %39 = vector.broadcast %cst_19 : f32 to vector<8x8xf32>
    %40 = arith.select %35, %22, %39 : vector<8x8xi1>, vector<8x8xf32>
    %cst_20 = arith.constant dense<0.000000e+00> : vector<8xf32>
    %41 = vector.multi_reduction <add>, %40, %cst_20 [1] : vector<8x8xf32> to vector<8xf32>
    %42 = vector.shape_cast %41 : vector<8xf32> to vector<8x1xf32>
    %cst_21 = arith.constant 0.000000e+00 : f32
    %43 = vector.broadcast %cst_21 : f32 to vector<8x8xf32>
    %44 = arith.select %38, %22, %43 : vector<8x8xi1>, vector<8x8xf32>
    %cst_22 = arith.constant dense<0.000000e+00> : vector<8xf32>
    %45 = vector.multi_reduction <add>, %44, %cst_22 [1] : vector<8x8xf32> to vector<8xf32>
    %46 = vector.shape_cast %45 : vector<8xf32> to vector<8x1xf32>
    %47 = tpu.iota {dimensions = array<i32: 1>} : vector<8x3xi32>
    %c0_i32 = arith.constant 0 : i32
    %48 = vector.broadcast %c0_i32 : i32 to vector<8x3xi32>
    %49 = arith.cmpi eq, %47, %48 : vector<8x3xi32>
    %c1_i32 = arith.constant 1 : i32
    %50 = vector.broadcast %c1_i32 : i32 to vector<8x3xi32>
    %51 = arith.cmpi eq, %47, %50 : vector<8x3xi32>
    %52 = arith.sitofp %33 : vector<8x1xi32> to vector<8x1xf32>
    %53 = vector.shape_cast %46 : vector<8x1xf32> to vector<8x1xf32>
    %54 = vector.broadcast %53 : vector<8x1xf32> to vector<8x3xf32>
    %55 = vector.shape_cast %52 : vector<8x1xf32> to vector<8x1xf32>
    %56 = vector.broadcast %55 : vector<8x1xf32> to vector<8x3xf32>
    %57 = arith.select %51, %54, %56 : vector<8x3xi1>, vector<8x3xf32>
    %58 = vector.shape_cast %42 : vector<8x1xf32> to vector<8x1xf32>
    %59 = vector.broadcast %58 : vector<8x1xf32> to vector<8x3xf32>
    %60 = arith.select %49, %59, %57 : vector<8x3xi1>, vector<8x3xf32>
    %c0_23 = arith.constant 0 : index
    %c0_24 = arith.constant 0 : index
    %61 = vector.load %arg8[%c0_23, %c0_24] : memref<8x3xf32, #tpu.memory_space<vmem>>, vector<8x3xf32>
    tpu.vector_store %arg8[%c0_23, %c0_24], %60 {strides = array<i32>} : memref<8x3xf32, #tpu.memory_space<vmem>>, vector<8x3xf32>,
    return
  }
  func.func @transform_0(%arg0: i32) -> (i32, i32) {
    %c0_i32 = arith.constant 0 : i32
    %c0_i32_0 = arith.constant 0 : i32
    return %arg0, %c0_i32 : i32, i32
  }
  func.func @transform_1(%arg0: i32) -> (i32, i32) {
    %c0_i32 = arith.constant 0 : i32
    %c0_i32_0 = arith.constant 0 : i32
    return %arg0, %c0_i32 : i32, i32
  }
  func.func @transform_2(%arg0: i32) -> (i32, i32) {
    %c0_i32 = arith.constant 0 : i32
    %c0_i32_0 = arith.constant 0 : i32
    return %arg0, %c0_i32 : i32, i32
  }
  func.func @transform_3(%arg0: i32) -> (i32, i32) {
    %c0_i32 = arith.constant 0 : i32
    %c0_i32_0 = arith.constant 0 : i32
    %c0_i32_1 = arith.constant 0 : i32
    return %c0_i32, %c0_i32_0 : i32, i32
  }
  func.func @transform_4(%arg0: i32) -> (i32, i32) {
    %c0_i32 = arith.constant 0 : i32
    %c0_i32_0 = arith.constant 0 : i32
    %c0_i32_1 = arith.constant 0 : i32
    return %c0_i32, %c0_i32_0 : i32, i32
  }
  func.func @transform_5(%arg0: i32) -> (i32, i32) {
    %c0_i32 = arith.constant 0 : i32
    %c0_i32_0 = arith.constant 0 : i32
    %c0_i32_1 = arith.constant 0 : i32
    return %c0_i32, %c0_i32_0 : i32, i32
  }
  func.func @transform_6(%arg0: i32) -> (i32, i32) {
    %c0_i32 = arith.constant 0 : i32
    %c0_i32_0 = arith.constant 0 : i32
    %c0_i32_1 = arith.constant 0 : i32
    return %c0_i32, %c0_i32_0 : i32, i32
  }
  func.func @transform_7(%arg0: i32) -> (i32, i32) {
    %c0_i32 = arith.constant 0 : i32
    %c0_i32_0 = arith.constant 0 : i32
    return %arg0, %c0_i32 : i32, i32
  }
}

</mosaic_0001>

<bundles_post_ra>
// kernel: tpu_custom_call.1
= control target key start
LH: loop header
LB: loop body
LE: loop exit
PB: predicated region body
PF: predicated region fallthrough
CT: control target
= control target key end

     0   :  { %vm34_vm0 = vcmask 195584   ;;  %vm71_vm1 = vcmask 523264   ;;  %vm95_vm2 = vcmask 64512   ;;  %v110_v23 = vlaneseq  ;;  %s266_s3 = inlined_call_operand.vmem [shape: f32[24,64], index: 3, kind: input, shape index: {}]   ;;  %s267_s5 = inlined_call_operand.vmem [shape: f32[64,8], index: 5, kind: input, shape index: {}]   ;;  %s268_s0 = inlined_call_operand.vmem [shape: f32[8,24], index: 0, kind: input, shape index: {}]   ;;  %s269_s4 = inlined_call_operand.vmem [shape: f32[1,64], index: 4, kind: input, shape index: {}]   ;;  %s270_s6 = inlined_call_operand.vmem [shape: f32[1,8], index: 6, kind: input, shape index: {}]   ;;  %s271_s2 = inlined_call_operand.vmem [shape: f32[8,8], index: 2, kind: input, shape index: {}]   ;;  %s272_s1 = inlined_call_operand.vmem [shape: s32[8,1], index: 1, kind: input, shape index: {}]   ;;  %s273_s7 = inlined_call_operand.vmem [shape: f32[8,3], index: 7, kind: output, shape index: {}]  }
   0x1   :  { %v29_v0 = vld [vmem:[%s266_s3 + $0x10] sm:$0xff]  ;;  %v28_v1 = vld [vmem:[%s266_s3 + $0x8] sm:$0xff]  ;;  %v66_v2 = vld [vmem:[%s267_s5 + $0x38] sm:$0xff]  ;;  %v168_v35 = vmov 0   ;;  %vm151_vm9 = vcmask 23552  }
   0x2   :  { %51 = vmatpush.msra.mxu0 %v29_v0  ;;  %v65_v3 = vld [vmem:[%s267_s5 + $0x30] sm:$0xff]  ;;  %v27_v4 = vld [vmem:[%s266_s3] sm:$0xff]  ;;  %83 = vmatpush.msra.mxu1 %v66_v2  ;;  %v64_v6 = vld [vmem:[%s267_s5 + $0x28] sm:$0xff]  ;;  %v111_v24 = vand.u32 127, %v110_v23 }
   0x3   :  { %v26_v5 = vld [vmem:[%s268_s0] sm:$0xff]  ;;  %v62_v8 = vld [vmem:[%s267_s5 + $0x18] sm:$0xff]  ;;  %v61_v9 = vld [vmem:[%s267_s5 + $0x10] sm:$0xff]  ;;  %160 = vset.pattern.permute.xlu2 %v168_v35  ;;  %161 = vset.pattern.permute.xlu0 %v168_v35 }
   0x4   :  { %52 = vmatpush.msra.mxu0 %v28_v1  ;;  %84 = vmatpush.msra.mxu1 %v65_v3  ;;  %v63_v7 = vld [vmem:[%s267_s5 + $0x20] sm:$0xff]  ;;  %v60_v10 = vld [vmem:[%s267_s5 + $0x8] sm:$0xff]  ;;  %vm147_vm7 = vcmp.eq.s32.totalorder %v111_v24, 1  ;;  %vm146_vm8 = vcmp.eq.s32.totalorder %v111_v24, 0 }
   0x5   :  { %v59_v11 = vld [vmem:[%s267_s5] sm:$0xff] }
   0x6   :  { %53 = vmatpush.msra.mxu0 %v27_v4  ;;  %85 = vmatpush.msra.mxu1 %v64_v6  ;;  %v162_v12 = vld [vmem:[%s269_s4] ss:$0 sm:$0xff] }
   0x7   :  { %157 = vmatmul.msk.f32.vlgmr.msra.gmra.mxu0 %vm34_vm0, %v26_v5  ;;  %v163_v16 = vld [vmem:[%s270_s6] ss:$0 sm:$0xff] }
   0x8   :  { %86 = vmatpush.msra.mxu1 %v63_v7  ;;  %v108_v18 = vld [vmem:[%s271_s2] sm:$0xff] }
   0x9   :  { %v133_v40 = vld [vmem:[%s272_s1] sm:$0xff] }
   0xa   :  { %87 = vmatpush.msra.mxu1 %v62_v8 }
   0xc   :  { %88 = vmatpush.msra.mxu1 %v61_v9 }
   0xe   :  { %89 = vmatpush.msra.mxu1 %v60_v10 }
  0x10   :  { %90 = vmatpush.msra.mxu1 %v59_v11 }
  0x84   :  { %v55_v13 = vpop.f32.mrf.mxu0 }
  0x85   :  { %v56_v14 = vadd.f32 %v162_v12, %v55_v13 }
  0x87   :  { %v58_v15 = vmax.f32 %v56_v14, 0.0 }
  0x89   :  { %158 = vmatmul.msk.f32.vlgmr.msra.gmra.mxu1 %vm71_vm1, %v58_v15 }
 0x106   :  { %v92_v17 = vpop.f32.mrf.mxu1 }
 0x107   :  { %v93_v19 = vadd.f32 %v163_v16, %v92_v17 }
 0x109   :  { %v109_v20 = vadd.f32 %v108_v18, %v93_v19  ;;  %v96_v22 = vsel %vm95_vm2, %v93_v19, -inf }
 0x10b   :  { %v112_v21 = vsel %vm95_vm2, %v109_v20, -inf }
 0x10c   :  { %113 = vmax.xlane.f32.xlu0 %v112_v21 }
 0x114   :  { %97 = vmax.xlane.f32.xlu0 %v96_v22 }
 0x17f   :  { %v114_v25 = vpop.xlane.xlu0 %113 }
 0x180   :  { %vm115_vm3 = vcmp.eq.f32.partialorder %v109_v20, %v114_v25 }
 0x181   :  { %v116_v26 = vsel %vm115_vm3, %v111_v24, 8 }
 0x182   :  { %v117_v27 = vsel %vm95_vm2, %v116_v26, 2147483647 }
 0x183   :  { %v119_v28 = vshra.s32 %v117_v27, 16  ;;  %v118_v36 = vand.u32 65535, %v117_v27 }
 0x185   :  { %v121_v29 = vcvt.s32.f32 %v119_v28  ;;  %v120_v38 = vcvt.s32.f32 %v118_v36 }
 0x187   :  { %122 = vmin.xlane.f32.xlu1 %v121_v29  ;;  %v98_v30 = vpop.xlane.xlu0 %97 }
 0x188   :  { %v99_v31 = vsub.f32 %v93_v19, %v98_v30 }
 0x18a   :  { %v100_v32 = vmul.f32 1.442695, %v99_v31 }
 0x18c   :  { %164 = vpow2.f32 %v100_v32 }
 0x192   :  { %v165_v33 = vpop.eup %164 }
 0x193   :  { %v102_v34 = vsel %vm95_vm2, %v165_v33, 0.0 }
 0x194   :  { %103 = vadd.xlane.f32.xlu1 %v102_v34 }
 0x1fa   :  { %v123_v37 = vpop.xlane.xlu1 %122 }
 0x1fb   :  { %vm124_vm4 = vcmp.eq.f32.partialorder %v121_v29, %v123_v37  ;;  %v129_v43 = vcvt.f32.s32 %v123_v37 }
 0x1fc   :  { %v125_v39 = vsel %vm124_vm4, %v120_v38, inf }
 0x1fd   :  { %126 = vmin.xlane.f32.xlu2 %v125_v39  ;;  %v130_v46 = vshll.u32 %v129_v43, 16 }
 0x207   :  { %v104_v41 = vpop.xlane.xlu1 %103 }
 0x208   :  { %166 = vlog2.f32 %v104_v41 }
 0x20e   :  { %v167_v42 = vpop.eup %166 }
 0x20f   :  { %v106_v44 = vmul.f32 0.6931472, %v167_v42 }
 0x211   :  { %v107_v49 = vsub.f32 %v99_v31, %v106_v44 }
 0x215   :  { %135 = vperm.xlu2 %160, %v133_v40  }
 0x270   :  { %v127_v45 = vpop.xlane.xlu2 %126 }
 0x271   :  { %v128_v47 = vcvt.f32.s32 %v127_v45 }
 0x273   :  { %v131_v48 = vadd.s32 %v130_v46, %v128_v47 }
 0x275   :  { %vm132_vm5 = vcmp.eq.s32.totalorder %v111_v24, %v131_v48  ;;  %v148_v55 = vcvt.s32.f32 %v131_v48 }
 0x276   :  { %v138_v50 = vsel %vm132_vm5, %v107_v49, 0.0 }
 0x277   :  { %v139_v51 = vsel %vm95_vm2, %v138_v50, 0.0 }
 0x278   :  { %v136_v52 = vpop.permute.xlu2 %135  ;;  %140 = vadd.xlane.f32.xlu1 %v139_v51 }
 0x279   :  { %vm137_vm6 = vcmp.eq.s32.totalorder %v111_v24, %v136_v52 }
 0x27a   :  { %v142_v53 = vsel %vm137_vm6, %v107_v49, 0.0 }
 0x27b   :  { %v143_v54 = vsel %vm95_vm2, %v142_v53, 0.0 }
 0x27c   :  { %144 = vadd.xlane.f32.xlu0 %v143_v54 }
 0x2eb   :  { %v141_v57 = vpop.xlane.xlu1 %140 }
 0x2ef   :  { %v145_v56 = vpop.xlane.xlu0 %144 }
 0x2f0   :  { %v149_v58 = vsel %vm147_vm7, %v145_v56, %v148_v55 }
 0x2f1   :  { %v150_v59 = vsel %vm146_vm8, %v141_v57, %v149_v58 }
 0x2f2   :  { %152 = vst.msk [vmem:[%s273_s7] sm:$0xff] %vm151_vm9, %v150_v59 }

</bundles_post_ra>
